<compile_context>
chip_gen: v7x
topology: tpu7x:2x2x1
jax: 0.10.0
libtpu: 0.0.40
codegen_flags: <defaults>
</compile_context>

<pallas_src>
import functools

import numpy as np
import jax
import jax.numpy as jnp
from jax.experimental import pallas as pl
from jax.experimental.pallas import tpu as pltpu

_MIB = 1024 * 1024


def _round_up(a, b):
    return (a + b - 1) // b * b


def _cdiv(a, b):
    return -(-a // b)


def _dct_matrix(p, norm="ortho"):
    """DCT-II matrix D (p, p), float64: dct(x)[k] = sum_n D[k, n] x[n] (torch_dct)."""
    n = np.arange(p, dtype=np.float64)
    k = n.reshape(-1, 1)
    D = np.cos(np.pi * (2.0 * n + 1.0) * k / (2.0 * p))
    if norm == "ortho":
        D *= np.sqrt(2.0 / p)
        D[0] *= 1.0 / np.sqrt(2.0)
    else:
        D *= 2.0
    return D


def _tpu_generation_info():
    """(vmem_capacity_bytes, is_v5e, is_v7x) with conservative fallbacks."""
    kind = ""
    try:
        kind = jax.devices()[0].device_kind.lower()
    except Exception:
        pass
    is_v7 = ("v7" in kind) or ("tpu7" in kind)
    is_v5e = ("v5 lite" in kind) or ("v5e" in kind) or ("v5lite" in kind)
    vmem_cap = 0
    try:
        vmem_cap = int(pltpu.get_tpu_info().vmem_capacity_bytes)
    except Exception:
        vmem_cap = 0
    if vmem_cap <= 0:
        vmem_cap = (64 if is_v7 else 128) * _MIB
    return vmem_cap, is_v5e, is_v7


def _build_folded_weight(proj_w, proj_b, C, p, dct_norm, high_freqs,
                         low2high_order, g, n_out, w_dtype):
    """Fold 2-D DCT + frequency selection + Linear into one (g*C*p*p, n_out) matrix.

    For g > 1 the matrix is g-way block-diagonal so g tokens packed along the
    feature axis of one kernel row map to g disjoint embed_dim column blocks.
    """
    D = _dct_matrix(p, dct_norm)
    T = np.kron(D, D)                        # dct_flat = T @ patch_flat (row-major k,l)
    if low2high_order is not None:
        T = T[np.asarray(low2high_order)]    # dct[..., low2high_order]
    if high_freqs is not None:
        T = T[-high_freqs:]                  # dct[..., -high_freqs:]
    sel = T.shape[0]
    pp = p * p
    Cpp = C * pp
    Wt = np.asarray(proj_w, np.float64).T    # (C*sel, E)
    E = Wt.shape[1]
    Wbase = np.zeros((Cpp, E), np.float64)
    for c in range(C):
        Wbase[c * pp:(c + 1) * pp] = T.T @ Wt[c * sel:(c + 1) * sel]
    b = np.asarray(proj_b, np.float64)
    Wfold = np.zeros((g * Cpp, n_out), np.float64)
    bias = np.zeros((1, n_out), np.float64)
    for t in range(g):
        Wfold[t * Cpp:(t + 1) * Cpp, t * E:(t + 1) * E] = Wbase
        bias[0, t * E:(t + 1) * E] = b
    return jnp.asarray(Wfold, w_dtype), jnp.asarray(bias, jnp.float32)


def _dct_embed_kernel(p_ref, w_ref, b_ref, o_ref, *, precision):
    # p_ref: (tile_rows, K)   packed patch rows (g tokens per row)
    # w_ref: (K, n_out)       folded DCT+selection+projection weight (block-diag if g>1)
    # b_ref: (1, n_out)       packed bias (f32)
    # o_ref: (tile_rows, n_out)  lane-dense output tile
    acc = jnp.dot(p_ref[...], w_ref[...],
                  preferred_element_type=jnp.float32, precision=precision)
    o_ref[...] = (acc + b_ref[...]).astype(o_ref.dtype)


@functools.partial(
    jax.jit,
    static_argnames=("patch_size", "pack", "tile_rows", "n_tiles", "embed_dim",
                     "compute_dtype", "out_dtype", "precision", "vmem_limit"))
def _dct_embed_call(x, w_fold, b_pad, *, patch_size, pack, tile_rows, n_tiles,
                    embed_dim, compute_dtype, out_dtype, precision, vmem_limit):
    B, C, H, W = x.shape
    p = patch_size
    g = pack
    nH, nW = H // p, W // p
    N = nH * nW
    M = B * N
    Cpp = C * p * p
    K, n_out = w_fold.shape
    M_rows_pad = tile_rows * n_tiles
    M_tok_pad = M_rows_pad * g

    # Patch extraction (unfold + permute of the reference) + cast + pad is a
    # pure data re-layout.  It sits in the SAME jit as the pallas_call so XLA
    # emits one fused copy, and allow_input_fusion lets that producer fuse
    # into the kernel input instead of a second HBM materialization.
    patches = (x.reshape(B, C, nH, p, nW, p)
               .transpose(0, 2, 4, 1, 3, 5)
               .reshape(M, Cpp)
               .astype(compute_dtype))
    if M_tok_pad != M:
        patches = jnp.pad(patches, ((0, M_tok_pad - M), (0, 0)))
    packed = patches.reshape(M_rows_pad, K)       # pack g tokens/row: free reshape

    out = pl.pallas_call(
        functools.partial(_dct_embed_kernel, precision=precision),
        out_shape=jax.ShapeDtypeStruct((M_rows_pad, n_out), out_dtype),
        grid_spec=pltpu.PrefetchScalarGridSpec(
            num_scalar_prefetch=0,
            grid=(n_tiles,),
            in_specs=[
                pl.BlockSpec((tile_rows, K), lambda i: (i, 0)),
                # Constant operands: same block index every step -> fetched once.
                pl.BlockSpec((K, n_out), lambda i: (0, 0)),
                pl.BlockSpec((1, n_out), lambda i: (0, 0)),
            ],
            out_specs=pl.BlockSpec((tile_rows, n_out), lambda i: (i, 0)),
        ),
        compiler_params=pltpu.CompilerParams(
            dimension_semantics=("parallel",),
            vmem_limit_bytes=vmem_limit,
            allow_input_fusion=[True, False, False],
        ),
    )(packed, w_fold, b_pad)

    if g > 1:
        tokens = out.reshape(M_tok_pad, embed_dim)   # free contiguous un-pack
    else:
        tokens = out[:, :embed_dim]                  # drop lane padding (if any)
    return tokens[:M].reshape(B, N, embed_dim)


def dct_patch_embed(x, proj_w, proj_b, *, patch_size=4, dct_norm="ortho",
                    high_freqs=None, low2high_order=None, tile_m=4096,
                    compute_dtype=None, out_dtype=None, precision=None):
    """Pallas implementation of DCTPatchEmbedder.forward. Returns (B, N, embed_dim)."""
    B, C, H, W = x.shape
    p = patch_size
    assert H % p == 0 and W % p == 0
    M = B * (H // p) * (W // p)
    Cpp = C * p * p
    E = int(proj_w.shape[0])

    cdt = np.dtype(x.dtype if compute_dtype is None else compute_dtype)
    odt = np.dtype(x.dtype if out_dtype is None else out_dtype)

    vmem_cap, _is_v5e, is_v7 = _tpu_generation_info()

    # Full-accuracy MXU contraction for the f32 path.  (On v5e this multi-pass
    # f32 matmul can become MXU-bound at large M; prefer compute_dtype=bfloat16
    # there, or pass an explicit lower `precision`.)
    if precision is None and cdt == np.dtype(np.float32):
        precision = jax.lax.Precision.HIGHEST

    # Token packing for small embed dims: g tokens per kernel row -> output is
    # exactly g*E = 128 lanes (lane-dense, no padding, no post-slice copy).
    g = 128 // E if (E < 128 and 128 % E == 0) else 1
    n_out = g * E if g > 1 else _round_up(E, 128)
    K = g * Cpp

    in_b, out_b = cdt.itemsize, odt.itemsize
    row_align = 16 if min(in_b, out_b) < 4 else 8

    # Row tiling over packed rows: large tiles (default 4096 tokens), balanced
    # and padded, clamped by a per-generation VMEM budget.
    tile_budget = min(vmem_cap * 5 // 8, 80 * _MIB)          # ~40 MiB on v7x
    const_bytes = 2 * (K * n_out * in_b + n_out * 4)          # weight + bias (2-buffered)
    per_row = 2 * (K * in_b + n_out * out_b)                   # 2-buffered in+out tiles
    M_rows = _cdiv(M, g)
    req_rows = max(row_align, _cdiv(int(tile_m), g))
    req_rows = min(req_rows, max(row_align, (tile_budget - const_bytes) // per_row))
    if is_v7 and M_rows > row_align:
        # v7x has 2 TensorCores: keep >= 2 grid tiles so the "parallel" axis
        # shards across both and they jointly saturate the 3.2 TB/s HBM.
        req_rows = min(req_rows, _round_up(_cdiv(M_rows, 2), row_align))
    req_rows = min(req_rows, _round_up(M_rows, row_align))
    n_tiles = _cdiv(M_rows, req_rows)
    tile_rows = _round_up(_cdiv(M_rows, n_tiles), row_align)

    est = tile_rows * per_row + const_bytes
    vmem_ceiling = min(vmem_cap * 7 // 8, 100 * _MIB)         # 56 MiB on v7x
    vmem_limit = int(min(max(32 * _MIB, 2 * est), vmem_ceiling))

    w_fold, b_pad = _build_folded_weight(proj_w, proj_b, C, p, dct_norm,
                                         high_freqs, low2high_order, g, n_out, cdt)

    return _dct_embed_call(
        x, w_fold, b_pad,
        patch_size=p, pack=g, tile_rows=tile_rows, n_tiles=n_tiles,
        embed_dim=E, compute_dtype=cdt, out_dtype=odt,
        precision=precision, vmem_limit=vmem_limit)


def dct_patch_embed_ref_np(x, proj_w, proj_b, *, patch_size=4, dct_norm="ortho",
                           high_freqs=None, low2high_order=None):
    """float64 NumPy reference mirroring DCTPatchEmbedder.forward exactly."""
    x = np.asarray(x, np.float64)
    w = np.asarray(proj_w, np.float64)
    b = np.asarray(proj_b, np.float64)
    B, C, H, Wd = x.shape
    p = patch_size
    nH, nW = H // p, Wd // p
    D = _dct_matrix(p, dct_norm)
    patches = x.reshape(B, C, nH, p, nW, p).transpose(0, 2, 4, 1, 3, 5)  # (B,nH,nW,C,p,p)
    dct = np.einsum("ki,bhwcij,lj->bhwckl", D, patches, D)
    dct = dct.reshape(B, nH * nW, C, p * p)
    if low2high_order is not None:
        dct = dct[..., np.asarray(low2high_order)]
    if high_freqs is not None:
        dct = dct[..., -high_freqs:]
    feats = dct.reshape(B, nH * nW, -1)
    return feats @ w.T + b


if __name__ == "__main__":
    # Small shapes consistent with the module: patch_size=4, in_chans=4.
    B, C, H, W = 2, 4, 16, 16
    patch_size = 4
    N = (H // patch_size) * (W // patch_size)

    key = jax.random.PRNGKey(0)
    kx, kw, kb = jax.random.split(key, 3)
    x = jax.random.normal(kx, (B, C, H, W), dtype=jnp.float32)

    # --- config 1: embed_dim=32 -> token-packing path (g=4, 128-lane out), f32 ---
    E1 = 32
    din1 = patch_size * patch_size * C
    bound1 = 1.0 / np.sqrt(din1)
    w1 = jax.random.uniform(kw, (E1, din1), jnp.float32, -bound1, bound1)
    b1 = jax.random.uniform(kb, (E1,), jnp.float32, -bound1, bound1)

    tok1 = jax.block_until_ready(dct_patch_embed(x, w1, b1, patch_size=patch_size))
    assert tok1.shape == (B, N, E1)
    ref1 = dct_patch_embed_ref_np(x, w1, b1, patch_size=patch_size)
    np.testing.assert_allclose(np.asarray(tok1), ref1, rtol=1e-4, atol=1e-4)

    # --- config 2: bf16 operands + bf16 output (memory-lean config, packed path) ---
    tok2 = jax.block_until_ready(
        dct_patch_embed(x, w1, b1, patch_size=patch_size,
                        compute_dtype=jnp.bfloat16, out_dtype=jnp.bfloat16))
    assert tok2.dtype == jnp.bfloat16 and tok2.shape == (B, N, E1)
    np.testing.assert_allclose(np.asarray(tok2, np.float32), ref1, rtol=4e-2, atol=4e-2)

    # --- config 3: low2high_order + high_freqs selection, embed_dim=192
    #     (no packing; exercises the lane-padded / sliced output path) ---
    high_freqs = 8
    low2high = np.argsort(
        np.add.outer(np.arange(patch_size), np.arange(patch_size)).reshape(-1),
        kind="stable")                     # zig-zag-like low->high frequency order
    E3 = 192
    din3 = high_freqs * C
    kw2, kb2 = jax.random.split(jax.random.PRNGKey(1))
    bound3 = 1.0 / np.sqrt(din3)
    w3 = jax.random.uniform(kw2, (E3, din3), jnp.float32, -bound3, bound3)
    b3 = jax.random.uniform(kb2, (E3,), jnp.float32, -bound3, bound3)
    tok3 = jax.block_until_ready(
        dct_patch_embed(x, w3, b3, patch_size=patch_size,
                        high_freqs=high_freqs, low2high_order=low2high))
    assert tok3.shape == (B, N, E3)
    ref3 = dct_patch_embed_ref_np(x, w3, b3, patch_size=patch_size,
                                  high_freqs=high_freqs, low2high_order=low2high)
    np.testing.assert_allclose(np.asarray(tok3), ref3, rtol=1e-4, atol=1e-4)

    print("KERNEL_OK")
</pallas_src>

<mosaic_0001>
module attributes {stable_mosaic.version = 11 : i64} {
  func.func @_dct_embed_kernel(%arg0: i32, %arg1: memref<8x256xf32, #tpu.memory_space<vmem>>, %arg2: memref<256x128xf32, #tpu.memory_space<vmem>>, %arg3: memref<1x128xf32, #tpu.memory_space<vmem>>, %arg4: memref<8x128xf32, #tpu.memory_space<vmem>>) attributes {dimension_semantics = [#tpu.dimension_semantics<parallel>], iteration_bounds = array<i64: 1>, scalar_prefetch = 0 : i64, scratch_operands = 0 : i64, tpu.core_type = #tpu.core_type<tc>, window_params = [{transform_indices = @transform_0, window_bounds = array<i64: 8, 256>}, {pipeline_mode = #tpu.pipeline_mode<synchronous>, transform_indices = @transform_1, window_bounds = array<i64: 256, 128>}, {pipeline_mode = #tpu.pipeline_mode<synchronous>, transform_indices = @transform_2, window_bounds = array<i64: 1, 128>}, {transform_indices = @transform_3, window_bounds = array<i64: 8, 128>}]} {
    %c0 = arith.constant 0 : index
    %c0_0 = arith.constant 0 : index
    %0 = vector.load %arg1[%c0, %c0_0] : memref<8x256xf32, #tpu.memory_space<vmem>>, vector<8x256xf32>
    %c0_1 = arith.constant 0 : index
    %c0_2 = arith.constant 0 : index
    %1 = vector.load %arg2[%c0_1, %c0_2] : memref<256x128xf32, #tpu.memory_space<vmem>>, vector<256x128xf32>
    %cst = arith.constant dense<0.000000e+00> : vector<8x128xf32>
    %2 = tpu.matmul %0, %1, %cst {dimension_numbers = #tpu.dot_dimension_numbers<[1], [0], [0], [1], [0, 0, 1, 1], [], []>, precision = #tpu.contract_precision<fp32>} : vector<8x256xf32>, vector<256x128xf32>, vector<8x128xf32> -> vector<8x128xf32>
    %c0_3 = arith.constant 0 : index
    %c0_4 = arith.constant 0 : index
    %3 = vector.load %arg3[%c0_3, %c0_4] : memref<1x128xf32, #tpu.memory_space<vmem>>, vector<1x128xf32>
    %4 = vector.broadcast %3 : vector<1x128xf32> to vector<8x128xf32>
    %5 = arith.addf %2, %4 : vector<8x128xf32>
    %c0_5 = arith.constant 0 : index
    %c0_6 = arith.constant 0 : index
    %6 = vector.load %arg4[%c0_5, %c0_6] : memref<8x128xf32, #tpu.memory_space<vmem>>, vector<8x128xf32>
    tpu.vector_store %arg4[%c0_5, %c0_6], %5 {strides = array<i32>} : memref<8x128xf32, #tpu.memory_space<vmem>>, vector<8x128xf32>,
    return
  }
  func.func @transform_0(%arg0: i32) -> (i32, i32) {
    %c0_i32 = arith.constant 0 : i32
    %c0_i32_0 = arith.constant 0 : i32
    return %arg0, %c0_i32 : i32, i32
  }
  func.func @transform_1(%arg0: i32) -> (i32, i32) {
    %c0_i32 = arith.constant 0 : i32
    %c0_i32_0 = arith.constant 0 : i32
    %c0_i32_1 = arith.constant 0 : i32
    return %c0_i32, %c0_i32_0 : i32, i32
  }
  func.func @transform_2(%arg0: i32) -> (i32, i32) {
    %c0_i32 = arith.constant 0 : i32
    %c0_i32_0 = arith.constant 0 : i32
    %c0_i32_1 = arith.constant 0 : i32
    return %c0_i32, %c0_i32_0 : i32, i32
  }
  func.func @transform_3(%arg0: i32) -> (i32, i32) {
    %c0_i32 = arith.constant 0 : i32
    %c0_i32_0 = arith.constant 0 : i32
    return %arg0, %c0_i32 : i32, i32
  }
}

</mosaic_0001>

<bundles_post_ra>
// kernel: _dct_embed_call.1
= control target key start
LH: loop header
LB: loop body
LE: loop exit
PB: predicated region body
PF: predicated region fallthrough
CT: control target
= control target key end

     0   :  { %s1851_s1 = inlined_call_operand.vmem [shape: f32[256,128], index: 1, kind: input, shape index: {}]   ;;  %s1852_s0 = inlined_call_operand.vmem [shape: f32[8,256], index: 0, kind: input, shape index: {}]   ;;  %s1853_s2 = inlined_call_operand.vmem [shape: f32[1,128], index: 2, kind: input, shape index: {}]   ;;  %s1854_s3 = inlined_call_operand.vmem [shape: f32[8,128], index: 3, kind: output, shape index: {}]  }
   0x1   :  { %v32_v0 = vld [vmem:[%s1851_s1 + $0x80] sm:$0xff]  ;;  %v33_v1 = vld [vmem:[%s1851_s1 + $0x88] sm:$0xff]  ;;  %v34_v7 = vld [vmem:[%s1851_s1 + $0x90] sm:$0xff] }
   0x2   :  { %v16_v2 = vld [vmem:[%s1851_s1] sm:$0xff]  ;;  %v104_v3 = vand.u32 4294901760, %v32_v0  ;;  %v107_v4 = vand.u32 4294901760, %v33_v1  ;;  %v17_v5 = vld [vmem:[%s1851_s1 + $0x8] sm:$0xff]  ;;  %v35_v8 = vld [vmem:[%s1851_s1 + $0x98] sm:$0xff]  ;;  %v110_v10 = vand.u32 4294901760, %v34_v7 }
   0x3   :  { %v56_v6 = vand.u32 4294901760, %v16_v2  ;;  %v59_v9 = vand.u32 4294901760, %v17_v5  ;;  %v113_v11 = vand.u32 4294901760, %v35_v8  ;;  %v18_v12 = vld [vmem:[%s1851_s1 + $0x10] sm:$0xff]  ;;  %v19_v13 = vld [vmem:[%s1851_s1 + $0x18] sm:$0xff]  ;;  %v36_v18 = vld [vmem:[%s1851_s1 + $0xa0] sm:$0xff] }
   0x4   :  { %v1369_v14 = vpack.c.bf16 %v107_v4, %v104_v3  ;;  %v62_v16 = vand.u32 4294901760, %v18_v12  ;;  %v65_v17 = vand.u32 4294901760, %v19_v13  ;;  %v37_v19 = vld [vmem:[%s1851_s1 + $0xa8] sm:$0xff]  ;;  %v20_v23 = vld [vmem:[%s1851_s1 + $0x20] sm:$0xff]  ;;  %v1392_v25 = vsub.f32 %v34_v7, %v110_v10  ;;  %v38_v37 = vld [vmem:[%s1851_s1 + $0xb0] sm:$0xff] }
   0x5   :  { %v1371_v15 = vsub.f32 %v16_v2, %v56_v6  ;;  %v1379_v20 = vpack.c.bf16 %v59_v9, %v56_v6  ;;  %v1381_v21 = vsub.f32 %v17_v5, %v59_v9  ;;  %v1383_v22 = vpack.c.bf16 %v113_v11, %v110_v10  ;;  %v21_v24 = vld [vmem:[%s1851_s1 + $0x28] sm:$0xff]  ;;  %v39_v42 = vld [vmem:[%s1851_s1 + $0xb8] sm:$0xff]  ;;  %v22_v55 = vld [vmem:[%s1851_s1 + $0x30] sm:$0xff] }
   0x6   :  { %1134 = vmatprep.subr.bf16.mxu0 %v1369_v14  ;;  %v1394_v26 = vsub.f32 %v35_v8, %v113_v11  ;;  %v1396_v27 = vpack.c.bf16 %v65_v17, %v62_v16  ;;  %v1398_v28 = vsub.f32 %v18_v12, %v62_v16  ;;  %v116_v29 = vand.u32 4294901760, %v36_v18  ;;  %v23_v56 = vld [vmem:[%s1851_s1 + $0x38] sm:$0xff]  ;;  %v40_v5 = vld [vmem:[%s1851_s1 + $0xc0] sm:$0xff]  ;;  %v41_v6 = vld [vmem:[%s1851_s1 + $0xc8] sm:$0xff] }
   0x7   :  { %1136 = vmatpush3.bf16.msra.mxu0 %v1379_v20  ;;  %v119_v30 = vand.u32 4294901760, %v37_v19  ;;  %v1401_v31 = vsub.f32 %v32_v0, %v104_v3  ;;  %v1403_v32 = vsub.f32 %v33_v1, %v107_v4  ;;  %v68_v33 = vand.u32 4294901760, %v20_v23  ;;  %v24_v11 = vld [vmem:[%s1851_s1 + $0x40] sm:$0xff] }
   0x8   :  { %1138 = vmatprep.subr.bf16.mxu0 %v1383_v22  ;;  %v71_v34 = vand.u32 4294901760, %v21_v24  ;;  %v1871_v35 = vand.u32 4294901760, %v1371_v15  ;;  %v1870_v36 = vand.u32 4294901760, %v1381_v21  ;;  %v1411_v38 = vsub.f32 %v19_v13, %v65_v17 }
   0x9   :  { %v1413_v39 = vpack.c.bf16 %v119_v30, %v116_v29  ;;  %v1415_v40 = vsub.f32 %v36_v18, %v116_v29  ;;  %v1876_v41 = vand.u32 4294901760, %v1401_v31  ;;  %v1421_v43 = vsub.f32 %v37_v19, %v119_v30  ;;  %v25_v29 = vld [vmem:[%s1851_s1 + $0x48] sm:$0xff] }
   0xa   :  { %v1873_v44 = vand.u32 4294901760, %v1403_v32  ;;  %v1424_v45 = vpack.c.bf16 %v71_v34, %v68_v33  ;;  %v1426_v46 = vsub.f32 %v20_v23, %v68_v33  ;;  %v171_v48 = vsub.f32 %v1371_v15, %v1871_v35 }
   0xb   :  { %1140 = vmatpush3.bf16.msra.mxu0 %v1396_v27  ;;  %v283_v47 = vsub.f32 %v1401_v31, %v1876_v41  ;;  %v178_v49 = vsub.f32 %v1381_v21, %v1870_v36  ;;  %v122_v50 = vand.u32 4294901760, %v38_v37  ;;  %v125_v52 = vand.u32 4294901760, %v39_v42 }
   0xc   :  { %1142 = vmatprep.subr.bf16.mxu0 %v1413_v39  ;;  %v290_v51 = vsub.f32 %v1403_v32, %v1873_v44  ;;  %v1868_v53 = vand.u32 4294901760, %v1392_v25  ;;  %v1867_v54 = vand.u32 4294901760, %v1394_v26  ;;  %v1450_v58 = vsub.f32 %v21_v24, %v71_v34 }
   0xd   :  { %v284_v57 = vand.u32 4294901760, %v283_v47  ;;  %v172_v59 = vand.u32 4294901760, %v171_v48  ;;  %v179_v60 = vand.u32 4294901760, %v178_v49  ;;  %v1452_v62 = vpack.c.bf16 %v125_v52, %v122_v50 }
   0xe   :  { %v291_v61 = vand.u32 4294901760, %v290_v51  ;;  %v1454_v63 = vsub.f32 %v38_v37, %v122_v50  ;;  %v297_v0 = vsub.f32 %v1392_v25, %v1868_v53  ;;  %v304_v2 = vsub.f32 %v1394_v26, %v1867_v54 }
   0xf   :  { %1144 = vmatpush3.bf16.msra.mxu0 %v1424_v45  ;;  %v1167_v1 = vpack.c.bf16 %v179_v60, %v172_v59  ;;  %v74_v3 = vand.u32 4294901760, %v22_v55  ;;  %v77_v4 = vand.u32 4294901760, %v23_v56  ;;  %v1866_v9 = vand.u32 4294901760, %v1398_v28 }
  0x10   :  { %v1165_v7 = vpack.c.bf16 %v291_v61, %v284_v57  ;;  %1146 = vmatprep.subr.bf16.mxu0 %v1452_v62  ;;  %v298_v8 = vand.u32 4294901760, %v297_v0  ;;  %v1863_v10 = vand.u32 4294901760, %v1411_v38  ;;  %v1475_v12 = vsub.f32 %v39_v42, %v125_v52  ;;  %v43_v57 = vld [vmem:[%s1851_s1 + $0xd8] sm:$0xff] }
  0x11   :  { %v305_v13 = vand.u32 4294901760, %v304_v2  ;;  %v1477_v16 = vpack.c.bf16 %v77_v4, %v74_v3  ;;  %v1479_v17 = vsub.f32 %v22_v55, %v74_v3  ;;  %v185_v18 = vsub.f32 %v1398_v28, %v1866_v9 }
  0x12   :  { %1166 = vmatprep.subr.bf16.mxu1 %v1165_v7  ;;  %v192_v19 = vsub.f32 %v1411_v38, %v1863_v10  ;;  %v128_v23 = vand.u32 4294901760, %v40_v5  ;;  %v131_v24 = vand.u32 4294901760, %v41_v6  ;;  %v1861_v33 = vand.u32 4294901760, %v1415_v40 }
  0x13   :  { %1168 = vmatpush3.bf16.msra.mxu1 %v1167_v1  ;;  %v1169_v30 = vpack.c.bf16 %v305_v13, %v298_v8  ;;  %1148 = vmatpush3.bf16.msra.mxu0 %v1477_v16  ;;  %v1860_v34 = vand.u32 4294901760, %v1421_v43  ;;  %v80_v37 = vand.u32 4294901760, %v24_v11  ;;  %v1493_v42 = vsub.f32 %v23_v56, %v77_v4  ;;  %v42_v56 = vld [vmem:[%s1851_s1 + $0xd0] sm:$0xff] }
  0x14   :  { %v186_v47 = vand.u32 4294901760, %v185_v18  ;;  %v193_v48 = vand.u32 4294901760, %v192_v19  ;;  %v1495_v49 = vpack.c.bf16 %v131_v24, %v128_v23  ;;  %v1497_v50 = vsub.f32 %v40_v5, %v128_v23  ;;  %v26_v1 = vld [vmem:[%s1851_s1 + $0x50] sm:$0xff]  ;;  %v27_v18 = vld [vmem:[%s1851_s1 + $0x58] sm:$0xff] }
  0x15   :  { %1170 = vmatprep.subr.bf16.mxu1 %v1169_v30  ;;  %v311_v51 = vsub.f32 %v1415_v40, %v1861_v33  ;;  %v318_v52 = vsub.f32 %v1421_v43, %v1860_v34  ;;  %v83_v55 = vand.u32 4294901760, %v25_v29  ;;  %v1512_v60 = vsub.f32 %v41_v6, %v131_v24 }
  0x16   :  { %v1171_v59 = vpack.c.bf16 %v193_v48, %v186_v47  ;;  %1150 = vmatprep.subr.bf16.mxu0 %v1495_v49  ;;  %v1858_v61 = vand.u32 4294901760, %v1426_v46  ;;  %v1857_v0 = vand.u32 4294901760, %v1450_v58  ;;  %v1521_v5 = vsub.f32 %v24_v11, %v80_v37 }
  0x17   :  { %v312_v2 = vand.u32 4294901760, %v311_v51  ;;  %v319_v3 = vand.u32 4294901760, %v318_v52  ;;  %v1519_v4 = vpack.c.bf16 %v83_v55, %v80_v37  ;;  %v134_v8 = vand.u32 4294901760, %v42_v56 }
  0x18   :  { %1172 = vmatpush3.bf16.msra.mxu1 %v1171_v59  ;;  %v199_v6 = vsub.f32 %v1426_v46, %v1858_v61  ;;  %v206_v7 = vsub.f32 %v1450_v58, %v1857_v0  ;;  %v137_v13 = vand.u32 4294901760, %v43_v57  ;;  %v1856_v11 = vand.u32 4294901760, %v1454_v63 }
  0x19   :  { %v1173_v19 = vpack.c.bf16 %v319_v3, %v312_v2  ;;  %1152 = vmatpush3.bf16.msra.mxu0 %v1519_v4  ;;  %v1855_v23 = vand.u32 4294901760, %v1475_v12  ;;  %v86_v24 = vand.u32 4294901760, %v26_v1  ;;  %v1535_v30 = vsub.f32 %v25_v29, %v83_v55  ;;  %v44_v29 = vld [vmem:[%s1851_s1 + $0xe0] sm:$0xff]  ;;  %v45_v55 = vld [vmem:[%s1851_s1 + $0xe8] sm:$0xff] }
  0x1a   :  { %v200_v37 = vand.u32 4294901760, %v199_v6  ;;  %v207_v47 = vand.u32 4294901760, %v206_v7  ;;  %v1537_v48 = vpack.c.bf16 %v137_v13, %v134_v8  ;;  %v1539_v51 = vsub.f32 %v42_v56, %v134_v8  ;;  %v28_v8 = vld [vmem:[%s1851_s1 + $0x60] sm:$0xff] }
  0x1b   :  { %1174 = vmatprep.subr.bf16.mxu1 %v1173_v19  ;;  %v325_v52 = vsub.f32 %v1454_v63, %v1856_v11  ;;  %v332_v59 = vsub.f32 %v1475_v12, %v1855_v23  ;;  %v89_v2 = vand.u32 4294901760, %v27_v18  ;;  %v1554_v56 = vsub.f32 %v43_v57, %v137_v13 }
  0x1c   :  { %v1175_v3 = vpack.c.bf16 %v207_v47, %v200_v37  ;;  %1154 = vmatprep.subr.bf16.mxu0 %v1537_v48  ;;  %v1859_v6 = vand.u32 4294901760, %v1479_v17  ;;  %v1862_v7 = vand.u32 4294901760, %v1493_v42  ;;  %v1563_v0 = vsub.f32 %v26_v1, %v86_v24 }
  0x1d   :  { %v326_v19 = vand.u32 4294901760, %v325_v52  ;;  %v333_v23 = vand.u32 4294901760, %v332_v59  ;;  %v1561_v11 = vpack.c.bf16 %v89_v2, %v86_v24  ;;  %v140_v37 = vand.u32 4294901760, %v44_v29  ;;  %v29_v52 = vld [vmem:[%s1851_s1 + $0x68] sm:$0xff] }
  0x1e   :  { %1176 = vmatpush3.bf16.msra.mxu1 %v1175_v3  ;;  %v213_v57 = vsub.f32 %v1479_v17, %v1859_v6  ;;  %v220_v13 = vsub.f32 %v1493_v42, %v1862_v7  ;;  %v143_v47 = vand.u32 4294901760, %v45_v55  ;;  %v1865_v1 = vand.u32 4294901760, %v1497_v50 }
  0x1f   :  { %v1177_v59 = vpack.c.bf16 %v333_v23, %v326_v19  ;;  %1156 = vmatpush3.bf16.msra.mxu0 %v1561_v11  ;;  %v1864_v24 = vand.u32 4294901760, %v1512_v60  ;;  %v92_v3 = vand.u32 4294901760, %v28_v8  ;;  %v1577_v61 = vsub.f32 %v27_v18, %v89_v2  ;;  %v46_v18 = vld [vmem:[%s1851_s1 + $0xf0] sm:$0xff]  ;;  %v47_v2 = vld [vmem:[%s1851_s1 + $0xf8] sm:$0xff] }
  0x20   :  { %v214_v6 = vand.u32 4294901760, %v213_v57  ;;  %v221_v34 = vand.u32 4294901760, %v220_v13  ;;  %v1579_v33 = vpack.c.bf16 %v143_v47, %v140_v37  ;;  %v1581_v7 = vsub.f32 %v44_v29, %v140_v37 }
  0x21   :  { %1178 = vmatprep.subr.bf16.mxu1 %v1177_v59  ;;  %v339_v23 = vsub.f32 %v1497_v50, %v1865_v1  ;;  %v346_v19 = vsub.f32 %v1512_v60, %v1864_v24  ;;  %v95_v10 = vand.u32 4294901760, %v29_v52  ;;  %v1596_v29 = vsub.f32 %v45_v55, %v143_v47  ;;  %v30_v59 = vld [vmem:[%s1851_s1 + $0x70] sm:$0xff] }
  0x22   :  { %v1179_v57 = vpack.c.bf16 %v221_v34, %v214_v6  ;;  %1158 = vmatprep.subr.bf16.mxu0 %v1579_v33  ;;  %v1869_v13 = vand.u32 4294901760, %v1521_v5  ;;  %v1872_v37 = vand.u32 4294901760, %v1535_v30  ;;  %v1605_v54 = vsub.f32 %v28_v8, %v92_v3 }
  0x23   :  { %v340_v24 = vand.u32 4294901760, %v339_v23  ;;  %v347_v1 = vand.u32 4294901760, %v346_v19  ;;  %v1603_v9 = vpack.c.bf16 %v95_v10, %v92_v3  ;;  %v146_v6 = vand.u32 4294901760, %v46_v18  ;;  %v31_v23 = vld [vmem:[%s1851_s1 + $0x78] sm:$0xff] }
  0x24   :  { %1180 = vmatpush3.bf16.msra.mxu1 %v1179_v57  ;;  %v227_v34 = vsub.f32 %v1521_v5, %v1869_v13  ;;  %v234_v55 = vsub.f32 %v1535_v30, %v1872_v37  ;;  %v149_v47 = vand.u32 4294901760, %v47_v2  ;;  %v1875_v8 = vand.u32 4294901760, %v1539_v51 }
  0x25   :  { %1899 = vst [vmem:[#allocation2_spill] sm:$0xff] %v1603_v9  ;;  %v1181_v19 = vpack.c.bf16 %v347_v1, %v340_v24  ;;  %1160 = vmatpush3.bf16.msra.mxu0 %v1603_v9  ;;  %v1874_v3 = vand.u32 4294901760, %v1554_v56  ;;  %v98_v57 = vand.u32 4294901760, %v30_v59  ;;  %v1619_v53 = vsub.f32 %v29_v52, %v95_v10  ;;  %v14_v10 = vld [vmem:[%s1852_s0] sm:$0xff]  ;;  %v15_v52 = vld [vmem:[%s1852_s0 + $0x8] sm:$0xff] }
  0x26   :  { %v228_v13 = vand.u32 4294901760, %v227_v34  ;;  %v235_v36 = vand.u32 4294901760, %v234_v55  ;;  %v1621_v35 = vpack.c.bf16 %v149_v47, %v146_v6  ;;  %v1623_v37 = vsub.f32 %v46_v18, %v146_v6 }
  0x27   :  { %1182 = vmatprep.subr.bf16.mxu1 %v1181_v19  ;;  %v353_v1 = vsub.f32 %v1539_v51, %v1875_v8  ;;  %v360_v24 = vsub.f32 %v1554_v56, %v1874_v3  ;;  %v101_v44 = vand.u32 4294901760, %v31_v23  ;;  %v1638_v18 = vsub.f32 %v47_v2, %v149_v47 }
  0x28   :  { %1900 = vst [vmem:[#allocation3_spill] sm:$0xff] %v1621_v35  ;;  %v1183_v34 = vpack.c.bf16 %v235_v36, %v228_v13  ;;  %1162 = vmatprep.subr.bf16.mxu0 %v1621_v35  ;;  %v1879_v55 = vand.u32 4294901760, %v1563_v0  ;;  %v1880_v6 = vand.u32 4294901760, %v1577_v61  ;;  %v1644_v41 = vsub.f32 %v30_v59, %v98_v57 }
  0x29   :  { %v354_v19 = vand.u32 4294901760, %v353_v1  ;;  %v361_v3 = vand.u32 4294901760, %v360_v24  ;;  %v1642_v8 = vpack.c.bf16 %v101_v44, %v98_v57  ;;  %v1652_v2 = vand.u32 4294901760, %v15_v52 }
  0x2a   :  { %1184 = vmatpush3.bf16.msra.mxu1 %v1183_v34  ;;  %v241_v9 = vsub.f32 %v1563_v0, %v1879_v55  ;;  %v248_v36 = vsub.f32 %v1577_v61, %v1880_v6  ;;  %v1654_v13 = vand.u32 4294901760, %v14_v10  ;;  %v1887_v1 = vand.u32 4294901760, %v1581_v7 }
  0x2b   :  { %1901 = vst [vmem:[#allocation4_spill] sm:$0xff] %v1642_v8  ;;  %1902 = vst [vmem:[#allocation5_spill] sm:$0xff] %v1652_v2  ;;  %v1185_v47 = vpack.c.bf16 %v361_v3, %v354_v19  ;;  %1164 = vmatpush3.bf16.msra.mxu0 %v1642_v8  ;;  %v1889_v59 = vand.u32 4294901760, %v1596_v29  ;;  %v1197_v57 = vpack.c.bf16 %v1403_v32, %v1401_v31  ;;  %392 = vmatprep.mubr.f32.mxu1 %v1652_v2 }
  0x2c   :  { %v242_v24 = vand.u32 4294901760, %v241_v9  ;;  %v249_v34 = vand.u32 4294901760, %v248_v36  ;;  %v1662_v55 = vsub.f32 %v15_v52, %v1652_v2  ;;  %v1665_v6 = vsub.f32 %v14_v10, %v1654_v13 }
  0x2d   :  { %1186 = vmatprep.subr.bf16.mxu1 %v1185_v47  ;;  %v367_v3 = vsub.f32 %v1581_v7, %v1887_v1  ;;  %v374_v19 = vsub.f32 %v1596_v29, %v1889_v59  ;;  %1198 = vmatprep.subr.bf16.mxu0 %v1197_v57  ;;  %v1888_v9 = vand.u32 4294901760, %v1605_v54  ;;  %v1890_v52 = vand.u32 4294901760, %v1619_v53 }
  0x2e   :  { %1903 = vst [vmem:[#allocation6_spill] sm:$0xff] %v1665_v6  ;;  %v1676_v36 = vsub.f32 %v31_v23, %v101_v44  ;;  %v1187_v10 = vpack.c.bf16 %v249_v34, %v242_v24  ;;  %v1891_v8 = vand.u32 4294901760, %v1662_v55  ;;  %v1892_v47 = vand.u32 4294901760, %v1665_v6 }
  0x2f   :  { %v368_v35 = vand.u32 4294901760, %v367_v3  ;;  %v375_v2 = vand.u32 4294901760, %v374_v19  ;;  %v255_v1 = vsub.f32 %v1605_v54, %v1888_v9  ;;  %v262_v57 = vsub.f32 %v1619_v53, %v1890_v52 }
  0x30   :  { %1188 = vmatpush3.bf16.msra.mxu1 %v1187_v10  ;;  %v154_v44 = vsub.f32 %v1662_v55, %v1891_v8  ;;  %v160_v23 = vsub.f32 %v1665_v6, %v1892_v47  ;;  %v1898_v24 = vand.u32 4294901760, %v1623_v37  ;;  %v1895_v34 = vand.u32 4294901760, %v1638_v18 }
  0x31   :  { %v1189_v3 = vpack.c.bf16 %v375_v2, %v368_v35  ;;  %v256_v19 = vand.u32 4294901760, %v255_v1  ;;  %v263_v9 = vand.u32 4294901760, %v262_v57  ;;  %v1199_v59 = vpack.c.bf16 %v1381_v21, %v1371_v15 }
  0x32   :  { %v155_v52 = vand.u32 4294901760, %v154_v44  ;;  %v161_v10 = vand.u32 4294901760, %v160_v23  ;;  %v381_v8 = vsub.f32 %v1623_v37, %v1898_v24  ;;  %v388_v47 = vsub.f32 %v1638_v18, %v1895_v34 }
  0x33   :  { %1190 = vmatprep.subr.bf16.mxu1 %v1189_v3  ;;  %v1191_v6 = vpack.c.bf16 %v263_v9, %v256_v19  ;;  %v1201_v35 = vpack.c.bf16 %v1394_v26, %v1392_v25  ;;  %v1897_v2 = vand.u32 4294901760, %v1644_v41  ;;  %v1896_v1 = vand.u32 4294901760, %v1676_v36 }
  0x34   :  { %156 = vmatprep.mubr.f32.mxu0 %v155_v52  ;;  %v382_v57 = vand.u32 4294901760, %v381_v8  ;;  %v389_v44 = vand.u32 4294901760, %v388_v47  ;;  %v1203_v19 = vpack.c.bf16 %v1411_v38, %v1398_v28  ;;  %v1205_v8 = vpack.c.bf16 %v1421_v43, %v1415_v40 }
  0x35   :  { %162 = vmatmul.mubr.f32.vlgmr.msra.gmra.mrb[0].mxu0 %v161_v10  ;;  %1192 = vmatpush3.bf16.msra.mxu1 %v1191_v6  ;;  %v269_v23 = vsub.f32 %v1644_v41, %v1897_v2  ;;  %v276_v9 = vsub.f32 %v1676_v36, %v1896_v1  ;;  %v1207_v6 = vpack.c.bf16 %v1450_v58, %v1426_v46  ;;  %v1904_v10 = vand.u32 4294901760, %v1401_v31 }
  0x36   :  { %1200 = vmatpush3.bf16.msra.mxu0 %v1199_v59  ;;  %v1193_v3 = vpack.c.bf16 %v389_v44, %v382_v57  ;;  %529 = vmatprep.mubr.f32.mxu0 %v1662_v55  ;;  %v1209_v47 = vpack.c.bf16 %v1475_v12, %v1454_v63  ;;  %v1905_v57 = vand.u32 4294901760, %v1403_v32  ;;  %v1906_v44 = vand.u32 4294901760, %v1371_v15 }
  0x37   :  { %1202 = vmatprep.subr.bf16.mxu0 %v1201_v35  ;;  %v270_v34 = vand.u32 4294901760, %v269_v23  ;;  %v277_v52 = vand.u32 4294901760, %v276_v9  ;;  %v1907_v23 = vand.u32 4294901760, %v1381_v21  ;;  %v1908_v1 = vand.u32 4294901760, %v1392_v25 }
  0x38   :  { %1194 = vmatprep.subr.bf16.mxu1 %v1193_v3  ;;  %v1261_v35 = vpack.c.bf16 %v1905_v57, %v1904_v10  ;;  %v1909_v3 = vand.u32 4294901760, %v1394_v26  ;;  %v1910_v24 = vand.u32 4294901760, %v1398_v28  ;;  %v1912_v31 = vand.u32 4294901760, %v1415_v40 }
  0x39   :  { %v1195_v59 = vpack.c.bf16 %v277_v52, %v270_v34  ;;  %v1263_v9 = vpack.c.bf16 %v1907_v23, %v1906_v44  ;;  %v1911_v34 = vand.u32 4294901760, %v1411_v38  ;;  %v1913_v32 = vand.u32 4294901760, %v1421_v43  ;;  %v1928_v23 = vld [vmem:[#allocation3_spill] sm:$0xff] }
  0x3a   :  { %v1265_v2 = vpack.c.bf16 %v1909_v3, %v1908_v1  ;;  %1204 = vmatpush3.bf16.msra.mxu0 %v1203_v19  ;;  %v1914_v15 = vand.u32 4294901760, %v1426_v46  ;;  %v1915_v21 = vand.u32 4294901760, %v1450_v58  ;;  %v1916_v25 = vand.u32 4294901760, %v1454_v63  ;;  %v1929_v3 = vld [vmem:[#allocation4_spill] sm:$0xff] }
  0x3b   :  { %v1267_v52 = vpack.c.bf16 %v1911_v34, %v1910_v24  ;;  %v1269_v10 = vpack.c.bf16 %v1913_v32, %v1912_v31  ;;  %v1917_v26 = vand.u32 4294901760, %v1475_v12  ;;  %1196 = vmatpush3.bf16.msra.mxu1 %v1195_v59  ;;  %1206 = vmatprep.subr.bf16.mxu0 %v1205_v8  ;;  %v1918_v28 = vand.u32 4294901760, %v1479_v17 }
  0x3c   :  { %v1271_v57 = vpack.c.bf16 %v1915_v21, %v1914_v15  ;;  %v1919_v38 = vand.u32 4294901760, %v1493_v42  ;;  %v1920_v43 = vand.u32 4294901760, %v1497_v50  ;;  %v1921_v24 = vand.u32 4294901760, %v1512_v60  ;;  %1230 = vmatprep.subr.bf16.mxu1 %v1369_v14 }
  0x3d   :  { %v1273_v1 = vpack.c.bf16 %v1917_v26, %v1916_v25  ;;  %v1922_v58 = vand.u32 4294901760, %v1521_v5  ;;  %v1923_v19 = vand.u32 4294901760, %v1535_v30  ;;  %v1211_v12 = vpack.c.bf16 %v1493_v42, %v1479_v17 }
  0x3e   :  { %v1275_v40 = vpack.c.bf16 %v1919_v38, %v1918_v28  ;;  %v1277_v46 = vpack.c.bf16 %v1921_v24, %v1920_v43  ;;  %394 = vmatmul.mubr.f32.vlgmr.msra.gmra.mrb[0].mxu1 %v1654_v13  ;;  %1208 = vmatpush3.bf16.msra.mxu0 %v1207_v6  ;;  %v1213_v8 = vpack.c.bf16 %v1512_v60, %v1497_v50  ;;  %v1924_v59 = vand.u32 4294901760, %v1662_v55  ;;  %v1925_v55 = vld [vmem:[#allocation6_spill] sm:$0xff]  ;;  %v1926_v6 = vld [vmem:[#allocation5_spill] sm:$0xff] }
  0x3f   :  { %v1279_v63 = vpack.c.bf16 %v1923_v19, %v1922_v58  ;;  %1232 = vmatpush3.bf16.msra.mxu1 %v1379_v20  ;;  %1210 = vmatprep.subr.bf16.mxu0 %v1209_v47  ;;  %v1215_v44 = vpack.c.bf16 %v1535_v30, %v1521_v5  ;;  %v1217_v17 = vpack.c.bf16 %v1554_v56, %v1539_v51  ;;  %v1927_v47 = vld [vmem:[#allocation2_spill] sm:$0xff]  ;;  %v1933_v34 = vand.u32 4294901760, %v1563_v0 }
  0x40   :  { %1234 = vmatprep.subr.bf16.mxu1 %v1383_v22  ;;  %636 = vmatprep.mubr.f32.mxu1 %v1924_v59  ;;  %v1219_v42 = vpack.c.bf16 %v1577_v61, %v1563_v0  ;;  %v1221_v50 = vpack.c.bf16 %v1596_v29, %v1581_v7  ;;  %v1223_v60 = vpack.c.bf16 %v1619_v53, %v1605_v54 }
  0x41   :  { %v1225_v5 = vpack.c.bf16 %v1638_v18, %v1623_v37  ;;  %v1227_v30 = vpack.c.bf16 %v1676_v36, %v1644_v41 }
  0x42   :  { %1212 = vmatpush3.bf16.msra.mxu0 %v1211_v12 }
  0x43   :  { %1236 = vmatpush3.bf16.msra.mxu1 %v1396_v27  ;;  %1214 = vmatprep.subr.bf16.mxu0 %v1213_v8 }
  0x44   :  { %1238 = vmatprep.subr.bf16.mxu1 %v1413_v39 }
  0x46   :  { %1216 = vmatpush3.bf16.msra.mxu0 %v1215_v44 }
  0x47   :  { %1240 = vmatpush3.bf16.msra.mxu1 %v1424_v45  ;;  %1218 = vmatprep.subr.bf16.mxu0 %v1217_v17 }
  0x48   :  { %1242 = vmatprep.subr.bf16.mxu1 %v1452_v62 }
  0x4a   :  { %1220 = vmatpush3.bf16.msra.mxu0 %v1219_v42 }
  0x4b   :  { %1244 = vmatpush3.bf16.msra.mxu1 %v1477_v16  ;;  %1222 = vmatprep.subr.bf16.mxu0 %v1221_v50 }
  0x4c   :  { %1246 = vmatprep.subr.bf16.mxu1 %v1495_v49 }
  0x4e   :  { %1224 = vmatpush3.bf16.msra.mxu0 %v1223_v60 }
  0x4f   :  { %1248 = vmatpush3.bf16.msra.mxu1 %v1519_v4  ;;  %1226 = vmatprep.subr.bf16.mxu0 %v1225_v5 }
  0x50   :  { %1250 = vmatprep.subr.bf16.mxu1 %v1537_v48 }
  0x52   :  { %1228 = vmatpush3.bf16.msra.mxu0 %v1227_v30 }
  0x53   :  { %1252 = vmatpush3.bf16.msra.mxu1 %v1561_v11  ;;  %1262 = vmatprep.subr.bf16.mxu0 %v1261_v35  ;;  %v1930_v35 = vand.u32 4294901760, %v1925_v55 }
  0x54   :  { %1254 = vmatprep.subr.bf16.mxu1 %v1579_v33 }
  0x55   :  { %532 = vmatmul.mubr.f32.vlgmr.msra.gmra.mrb[2].mxu0 %v1925_v55 }
  0x56   :  { %1264 = vmatpush3.bf16.msra.mxu0 %v1263_v9  ;;  %806 = vmatprep.mubr.f32.mxu0 %v1926_v6  ;;  %v1932_v9 = vand.u32 4294901760, %v1554_v56 }
  0x57   :  { %1256 = vmatpush3.bf16.msra.mxu1 %v1927_v47  ;;  %1266 = vmatprep.subr.bf16.mxu0 %v1265_v2  ;;  %v1931_v2 = vand.u32 4294901760, %v1539_v51  ;;  %v1937_v51 = vand.u32 4294901760, %v1605_v54 }
  0x58   :  { %1258 = vmatprep.subr.bf16.mxu1 %v1928_v23 }
  0x5a   :  { %1268 = vmatpush3.bf16.msra.mxu0 %v1267_v52 }
  0x5b   :  { %1260 = vmatpush3.bf16.msra.mxu1 %v1929_v3  ;;  %1270 = vmatprep.subr.bf16.mxu0 %v1269_v10 }
  0x5c   :  { %1294 = vmatprep.subr.bf16.mxu1 %v1369_v14  ;;  %v1281_v14 = vpack.c.bf16 %v1932_v9, %v1931_v2 }
  0x5e   :  { %640 = vmatmul.mubr.f32.vlgmr.msra.gmra.mrb[2].mxu1 %v1930_v35  ;;  %1272 = vmatpush3.bf16.msra.mxu0 %v1271_v57 }
  0x5f   :  { %1296 = vmatpush3.bf16.msra.mxu1 %v1379_v20  ;;  %1274 = vmatprep.subr.bf16.mxu0 %v1273_v1  ;;  %v1934_v20 = vand.u32 4294901760, %v1577_v61  ;;  %v1939_v61 = vand.u32 4294901760, %v1623_v37 }
  0x60   :  { %1298 = vmatprep.subr.bf16.mxu1 %v1383_v22  ;;  %910 = vmatprep.mubr.f32.mxu1 %v1926_v6  ;;  %v1935_v22 = vand.u32 4294901760, %v1581_v7  ;;  %v1941_v7 = vand.u32 4294901760, %v1644_v41 }
  0x61   :  { %v1283_v52 = vpack.c.bf16 %v1934_v20, %v1933_v34 }
  0x62   :  { %1276 = vmatpush3.bf16.msra.mxu0 %v1275_v40 }
  0x63   :  { %1300 = vmatpush3.bf16.msra.mxu1 %v1396_v27  ;;  %1278 = vmatprep.subr.bf16.mxu0 %v1277_v46  ;;  %v1936_v27 = vand.u32 4294901760, %v1596_v29 }
  0x64   :  { %1302 = vmatprep.subr.bf16.mxu1 %v1413_v39  ;;  %v1938_v39 = vand.u32 4294901760, %v1619_v53 }
  0x65   :  { %v1285_v31 = vpack.c.bf16 %v1936_v27, %v1935_v22 }
  0x66   :  { %1280 = vmatpush3.bf16.msra.mxu0 %v1279_v63  ;;  %v1287_v56 = vpack.c.bf16 %v1938_v39, %v1937_v51 }
  0x67   :  { %1304 = vmatpush3.bf16.msra.mxu1 %v1424_v45  ;;  %1282 = vmatprep.subr.bf16.mxu0 %v1281_v14  ;;  %v1940_v45 = vand.u32 4294901760, %v1638_v18 }
  0x68   :  { %1306 = vmatprep.subr.bf16.mxu1 %v1452_v62  ;;  %v1942_v62 = vand.u32 4294901760, %v1676_v36 }
  0x69   :  { %v1289_v0 = vpack.c.bf16 %v1940_v45, %v1939_v61 }
  0x6a   :  { %1284 = vmatpush3.bf16.msra.mxu0 %v1283_v52  ;;  %v1291_v29 = vpack.c.bf16 %v1942_v62, %v1941_v7 }
  0x6b   :  { %1308 = vmatpush3.bf16.msra.mxu1 %v1477_v16  ;;  %1286 = vmatprep.subr.bf16.mxu0 %v1285_v31  ;;  %v922_v16 = vld [vmem:[%s1853_s2] ss:$0 sm:$0xff] }
  0x6c   :  { %1310 = vmatprep.subr.bf16.mxu1 %v1495_v49 }
  0x6e   :  { %1288 = vmatpush3.bf16.msra.mxu0 %v1287_v56 }
  0x6f   :  { %1312 = vmatpush3.bf16.msra.mxu1 %v1519_v4  ;;  %1290 = vmatprep.subr.bf16.mxu0 %v1289_v0 }
  0x70   :  { %1314 = vmatprep.subr.bf16.mxu1 %v1537_v48 }
  0x72   :  { %1292 = vmatpush3.bf16.msra.mxu0 %v1291_v29 }
  0x73   :  { %1316 = vmatpush3.bf16.msra.mxu1 %v1561_v11 }
  0x74   :  { %1318 = vmatprep.subr.bf16.mxu1 %v1579_v33 }
  0x75   :  { %808 = vmatmul.mubr.f32.vlgmr.msra.gmra.mrb[4].mxu0 %v1654_v13 }
  0x77   :  { %1320 = vmatpush3.bf16.msra.mxu1 %v1927_v47 }
  0x78   :  { %1322 = vmatprep.subr.bf16.mxu1 %v1928_v23 }
  0x7b   :  { %1324 = vmatpush3.bf16.msra.mxu1 %v1929_v3 }
  0x7e   :  { %912 = vmatmul.mubr.f32.vlgmr.msra.gmra.mrb[4].mxu1 %v1654_v13 }
 0x108   :  { %v955_v41 = vpop.f32.mrb[0].mxu0 }
 0x109   :  { %v956_v53 = vpop.f32.mrb[1].mxu0 }
 0x10a   :  { %v957_v54 = vadd.f32 %v956_v53, %v955_v41 }
 0x10c   :  { %v164_v49 = vadd.f32 %v957_v54, %v922_v16 }
 0x111   :  { %v990_v4 = vpop.f32.mrb[0].mxu1 }
 0x112   :  { %v991_v33 = vpop.f32.mrb[1].mxu1 }
 0x113   :  { %v992_v11 = vadd.f32 %v991_v33, %v990_v4 }
 0x115   :  { %v396_v48 = vadd.f32 %v992_v11, %v164_v49 }
 0x128   :  { %v1025_v37 = vpop.f32.mrb[2].mxu0 }
 0x129   :  { %v1026_v18 = vpop.f32.mrb[3].mxu0 }
 0x12a   :  { %v1027_v36 = vadd.f32 %v1026_v18, %v1025_v37 }
 0x12c   :  { %v534_v32 = vadd.f32 %v1027_v36, %v396_v48 }
 0x131   :  { %v1060_v10 = vpop.f32.mrb[2].mxu1 }
 0x132   :  { %v1061_v15 = vpop.f32.mrb[3].mxu1 }
 0x133   :  { %v1062_v21 = vadd.f32 %v1061_v15, %v1060_v10 }
 0x135   :  { %v642_v13 = vadd.f32 %v1062_v21, %v534_v32 }
 0x148   :  { %v1095_v57 = vpop.f32.mrb[4].mxu0 }
 0x149   :  { %v1096_v25 = vpop.f32.mrb[5].mxu0 }
 0x14a   :  { %v1097_v26 = vadd.f32 %v1096_v25, %v1095_v57 }
 0x14c   :  { %v810_v1 = vadd.f32 %v1097_v26, %v642_v13 }
 0x151   :  { %v1130_v28 = vpop.f32.mrb[4].mxu1 }
 0x152   :  { %v1131_v38 = vpop.f32.mrb[5].mxu1 }
 0x153   :  { %v1132_v40 = vadd.f32 %v1131_v38, %v1130_v28 }
 0x155   :  { %v914_v43 = vadd.f32 %v1132_v40, %v810_v1 }
 0x157   :  { %917 = vst [vmem:[%s1854_s3] sm:$0xff] %v914_v43 }

</bundles_post_ra>
